<compile_context>
chip_gen: v7x
topology: tpu7x:2x2x1
jax: 0.10.0
libtpu: 0.0.40
codegen_flags: <defaults>
</compile_context>

<pallas_src>
import functools
import math

import numpy as np

import jax
import jax.numpy as jnp
from jax.experimental import pallas as pl
from jax.experimental.pallas import tpu as pltpu


# ----------------------------------------------------------------------------
# Schedule construction (numpy, matches the PyTorch reference exactly).
# ----------------------------------------------------------------------------
def cosine_beta_schedule(timesteps, s=0.008, raise_to_power: float = 1):
    steps = timesteps + 2
    x = np.linspace(0, steps, steps)
    alphas_cumprod = np.cos((x / steps + s) / (1 + s) * np.pi * 0.5) ** 2
    alphas_cumprod = alphas_cumprod / alphas_cumprod[0]
    betas = 1 - alphas_cumprod[1:] / alphas_cumprod[:-1]
    betas = np.clip(betas, a_min=0, a_max=0.999)
    alphas = 1.0 - betas
    alphas_cumprod = np.cumprod(alphas, axis=0)
    if raise_to_power != 1:
        alphas_cumprod = np.power(alphas_cumprod, raise_to_power)
    return alphas_cumprod


def clip_noise_schedule(alphas2, clip_value=0.001):
    alphas2 = np.concatenate([np.ones(1), alphas2], axis=0)
    alphas_step = alphas2[1:] / alphas2[:-1]
    alphas_step = np.clip(alphas_step, a_min=clip_value, a_max=1.0)
    alphas2 = np.cumprod(alphas_step, axis=0)
    return alphas2


def polynomial_schedule(timesteps: int, s=0.0001, power=3.0):
    steps = timesteps + 1
    x = np.linspace(0, steps, steps)
    alphas2 = (1 - np.power(x / steps, power)) ** 2
    alphas2 = clip_noise_schedule(alphas2, clip_value=0.001)
    precision = 1 - 2 * s
    alphas2 = precision * alphas2 + s
    return alphas2


def make_gamma_table(noise_schedule: str, timesteps: int, precision: float) -> np.ndarray:
    """Deterministic construction of the (non-learned) gamma parameter."""
    if noise_schedule == "cosine":
        alphas2 = cosine_beta_schedule(timesteps)
    elif "polynomial" in noise_schedule:
        splits = noise_schedule.split("_")
        assert len(splits) == 2
        power = float(splits[1])
        alphas2 = polynomial_schedule(timesteps, s=precision, power=power)
    else:
        raise ValueError(noise_schedule)
    sigmas2 = 1 - alphas2
    log_alphas2 = np.log(alphas2)
    log_sigmas2 = np.log(sigmas2)
    log_alphas2_to_sigmas2 = log_alphas2 - log_sigmas2
    gamma = -log_alphas2_to_sigmas2
    return np.asarray(gamma, dtype=np.float32)  # shape: (timesteps + 1,)


# ----------------------------------------------------------------------------
# Init-time table packing (numpy, done once).
# ----------------------------------------------------------------------------
LANES = 128
NUM_CHUNKS = 3   # f32 has a 24-bit mantissa -> exactly 3 bf16-exact pieces


def _split_f32_into_bf16_exact_chunks(x: np.ndarray, n_chunks: int = NUM_CHUNKS):
    """Split f32 array into n_chunks f32 arrays whose values are exactly
    bf16-representable (low 16 encoding bits zero) and sum back to x exactly.

    This makes the MXU one-hot gather bit-exact regardless of how Mosaic
    decomposes an f32 matmul into bf16 passes."""
    x = np.ascontiguousarray(x, dtype=np.float32)
    chunks, rem = [], x.copy()
    for _ in range(n_chunks):
        hi = (rem.view(np.uint32) & np.uint32(0xFFFF0000)).view(np.float32).copy()
        chunks.append(hi)
        rem = (rem - hi).astype(np.float32)         # exact (non-overlapping mantissa bits)
    assert np.all(rem == 0.0), "bf16-exact chunk split did not terminate"
    recon = chunks[0].copy()
    for c in chunks[1:]:
        recon = (recon + c).astype(np.float32)      # exact re-summation
    assert np.array_equal(recon, x), "bf16-exact chunk split is not exact"
    return chunks


def init_predefined_noise_schedule(noise_schedule: str, timesteps: int, precision: float):
    """Init-time setup: raw gamma table plus the lane-major, chunk-split device table.

    Table layout: gamma entry i lives at row i // 128, lane i % 128 of an
    (r_tab, 128) f32 array; the 3 bf16-exact chunks are stacked along sublanes
    -> a single (3 * r_tab, 128) f32 array that stays resident in VMEM.
    """
    gamma = make_gamma_table(noise_schedule, timesteps, precision)      # (T+1,) f32
    length = gamma.shape[0]
    r_tab = max(1, math.ceil(length / LANES))
    r_tab = ((r_tab + 7) // 8) * 8                                      # sublane-aligned rows
    padded = np.zeros((r_tab * LANES,), np.float32)
    padded[:length] = gamma                                             # padding never selected
    table = padded.reshape(r_tab, LANES)                                # lane-major
    chunks = _split_f32_into_bf16_exact_chunks(table)
    tab_stacked = np.concatenate(chunks, axis=0)                        # (3*r_tab, 128) f32
    return gamma, jnp.asarray(tab_stacked)


# ----------------------------------------------------------------------------
# Pallas kernel: two-level gather gamma[clip(round(t * T), 0, T)].
# ----------------------------------------------------------------------------
def gamma_lookup_kernel(t_ref, tab_ref, o_ref, *, timesteps: int):
    # t_ref:   (block_sub, 128) f32  -- lane-dense query times
    # tab_ref: (3*r_tab, 128)   f32  -- lane-major gamma table, 3 bf16-exact chunks
    #                                   stacked on sublanes; resident across the grid
    # o_ref:   (block_sub, 128) f32  -- gamma[clip(round(t*T), 0, T)]
    r_tab = tab_ref.shape[0] // NUM_CHUNKS
    block_sub = t_ref.shape[0]

    t = t_ref[...]
    # torch.round / jnp.round both use round-half-to-even.
    idx = jnp.round(t * jnp.float32(timesteps)).astype(jnp.int32)
    idx = jnp.clip(idx, 0, timesteps)            # never read the zero padding
    hi = jnp.right_shift(idx, 7)                 # idx // 128 -> table row
    lo = jnp.bitwise_and(idx, LANES - 1)         # idx %  128 -> table lane

    tab = tab_ref[...]                           # (3*r_tab, 128)
    # Hoisted constants (JAX does not CSE iota/broadcast inside the loop).
    lane_iota = jax.lax.broadcasted_iota(jnp.int32, (LANES, LANES), 0)   # [l, k] = l
    row_iota = jax.lax.broadcasted_iota(jnp.int32, (r_tab, LANES), 0)    # [r, k] = r

    out_rows = []
    for s in range(block_sub):                   # static, unrolled
        lo_row = lo[s:s + 1, :]                  # (1, 128)
        hi_row = hi[s:s + 1, :]                  # (1, 128)
        # Lane-level gather on the MXU: onehot[l, k] = [lo_k == l] (exact 0/1).
        onehot = (lane_iota == lo_row).astype(jnp.float32)                # (128, 128)
        g_all = jnp.dot(tab, onehot, preferred_element_type=jnp.float32)  # (3*r_tab, 128)
        # Re-sum the three bf16-exact chunks -> exact f32 gamma[., lo_k].
        g = (g_all[0:r_tab] + g_all[r_tab:2 * r_tab]) + g_all[2 * r_tab:3 * r_tab]
        # Row-level select on the VPU: pick sublane hi_k, reduce over r_tab rows.
        sel = row_iota == hi_row                                          # (r_tab, 128)
        out_rows.append(jnp.sum(jnp.where(sel, g, 0.0), axis=0, keepdims=True))

    # Single unmasked lane/sublane-dense store for the whole block.
    o_ref[...] = jnp.concatenate(out_rows, axis=0).astype(o_ref.dtype)


def predefined_noise_schedule_forward(t: jax.Array, tab_stacked: jax.Array,
                                      timesteps: int) -> jax.Array:
    """Equivalent of PredefinedNoiseSchedule.forward(t): gamma[round(t * T)].

    tab_stacked is the (3*r_tab, 128) lane-major chunked table built once by
    init_predefined_noise_schedule.  (For tiny batches, prefer fusing this lookup
    into the downstream alpha_t/sigma_t kernel, or a plain jnp.take; the Pallas
    path earns its keep at large per-node/per-atom batches.)
    """
    orig_shape = t.shape
    flat = t.reshape(-1).astype(jnp.float32)
    b = flat.shape[0]
    n_rows = max(1, (b + LANES - 1) // LANES)
    # Largest block (up to 64 sublane rows = 8192 queries/step) the batch fills;
    # big batches get grid >= 2 so the "parallel" axis splits across v7x's 2 TCs.
    block_sub = max(c for c in (8, 16, 32, 64) if c <= max(n_rows, 8))
    rows_padded = ((n_rows + block_sub - 1) // block_sub) * block_sub
    b_pad = rows_padded * LANES
    if b_pad != b:
        flat = jnp.pad(flat, (0, b_pad - b))     # pad value 0.0 -> idx 0 (discarded)
    t2 = flat.reshape(rows_padded, LANES)        # lane-dense queries

    kernel = functools.partial(gamma_lookup_kernel, timesteps=int(timesteps))
    out = pl.pallas_call(
        kernel,
        out_shape=jax.ShapeDtypeStruct((rows_padded, LANES), jnp.float32),
        grid=(rows_padded // block_sub,),
        in_specs=[
            pl.BlockSpec((block_sub, LANES), lambda i: (i, 0)),   # query tile
            pl.BlockSpec(tab_stacked.shape, lambda i: (0, 0)),    # table (VMEM-resident)
        ],
        out_specs=pl.BlockSpec((block_sub, LANES), lambda i: (i, 0)),
        compiler_params=pltpu.CompilerParams(
            dimension_semantics=("parallel",)),
    )(t2, tab_stacked)

    return out.reshape(-1)[:b].reshape(orig_shape)


# ----------------------------------------------------------------------------
if __name__ == "__main__":
    noise_schedule = "polynomial_2"   # same default family as EDM configs
    timesteps = 1000
    precision = 1e-5

    gamma_np, tab_stacked = init_predefined_noise_schedule(noise_schedule, timesteps, precision)

    key = jax.random.PRNGKey(0)
    k1, k2 = jax.random.split(key)

    # Case 1: small batch of normalized diffusion times in [0, 1], shape (8, 1),
    # including the exact endpoints.
    t_small = jax.random.uniform(k1, (8, 1), dtype=jnp.float32)
    t_small = t_small.at[0, 0].set(0.0).at[1, 0].set(1.0)

    # Case 2: larger flat batch (per-node times), not a multiple of the tile,
    # to exercise padding + lane-dense tiling.
    t_large = jax.random.uniform(k2, (300,), dtype=jnp.float32)

    out_small = jax.block_until_ready(
        predefined_noise_schedule_forward(t_small, tab_stacked, timesteps))
    out_large = jax.block_until_ready(
        predefined_noise_schedule_forward(t_large, tab_stacked, timesteps))

    # Reference check in plain numpy (same f32 math, same round-half-to-even).
    def ref_fn(t_arr):
        t_np = np.asarray(t_arr, dtype=np.float32)
        idx = np.round(t_np * np.float32(timesteps)).astype(np.int64)
        idx = np.clip(idx, 0, timesteps)
        return gamma_np[idx]

    np.testing.assert_allclose(np.asarray(out_small), ref_fn(t_small), rtol=0, atol=0)
    np.testing.assert_allclose(np.asarray(out_large), ref_fn(t_large), rtol=0, atol=0)
    assert out_small.shape == t_small.shape and out_small.dtype == jnp.float32
    assert out_large.shape == t_large.shape and out_large.dtype == jnp.float32

    print("KERNEL_OK")
</pallas_src>

<mosaic_0001>
module attributes {stable_mosaic.version = 11 : i64} {
  func.func @gamma_lookup_kernel(%arg0: i32, %arg1: memref<8x128xf32, #tpu.memory_space<vmem>>, %arg2: memref<24x128xf32, #tpu.memory_space<vmem>>, %arg3: memref<8x128xf32, #tpu.memory_space<vmem>>) attributes {dimension_semantics = [#tpu.dimension_semantics<parallel>], iteration_bounds = array<i64: 1>, scalar_prefetch = 0 : i64, scratch_operands = 0 : i64, tpu.core_type = #tpu.core_type<tc>, window_params = [{transform_indices = @transform_0, window_bounds = array<i64: 8, 128>}, {pipeline_mode = #tpu.pipeline_mode<synchronous>, transform_indices = @transform_1, window_bounds = array<i64: 24, 128>}, {transform_indices = @transform_2, window_bounds = array<i64: 8, 128>}]} {
    %c0 = arith.constant 0 : index
    %c0_0 = arith.constant 0 : index
    %0 = vector.load %arg1[%c0, %c0_0] : memref<8x128xf32, #tpu.memory_space<vmem>>, vector<8x128xf32>
    %cst = arith.constant 1.000000e+03 : f32
    %1 = vector.broadcast %cst : f32 to vector<8x128xf32>
    %2 = arith.mulf %0, %1 : vector<8x128xf32>
    %3 = math.roundeven %2 : vector<8x128xf32>
    %4 = arith.fptosi %3 : vector<8x128xf32> to vector<8x128xi32>
    %c0_i32 = arith.constant 0 : i32
    %c1000_i32 = arith.constant 1000 : i32
    %5 = vector.broadcast %c0_i32 : i32 to vector<8x128xi32>
    %6 = arith.maxsi %5, %4 : vector<8x128xi32>
    %7 = vector.broadcast %c1000_i32 : i32 to vector<8x128xi32>
    %8 = arith.minsi %7, %6 : vector<8x128xi32>
    %c7_i32 = arith.constant 7 : i32
    %9 = vector.broadcast %c7_i32 : i32 to vector<8x128xi32>
    %10 = arith.shrsi %8, %9 : vector<8x128xi32>
    %c127_i32 = arith.constant 127 : i32
    %11 = vector.broadcast %c127_i32 : i32 to vector<8x128xi32>
    %12 = arith.andi %8, %11 : vector<8x128xi32>
    %c0_1 = arith.constant 0 : index
    %c0_2 = arith.constant 0 : index
    %13 = vector.load %arg2[%c0_1, %c0_2] : memref<24x128xf32, #tpu.memory_space<vmem>>, vector<24x128xf32>
    %14 = tpu.iota {dimensions = array<i32: 0>} : vector<128x128xi32>
    %15 = tpu.iota {dimensions = array<i32: 0>} : vector<8x128xi32>
    %16 = vector.extract_strided_slice %12 {offsets = [0, 0], sizes = [1, 128], strides = [1, 1]} : vector<8x128xi32> to vector<1x128xi32>
    %17 = vector.extract_strided_slice %10 {offsets = [0, 0], sizes = [1, 128], strides = [1, 1]} : vector<8x128xi32> to vector<1x128xi32>
    %18 = vector.broadcast %16 : vector<1x128xi32> to vector<128x128xi32>
    %19 = arith.cmpi eq, %14, %18 : vector<128x128xi32>
    %20 = arith.extui %19 : vector<128x128xi1> to vector<128x128xi32>
    %21 = arith.sitofp %20 : vector<128x128xi32> to vector<128x128xf32>
    %cst_3 = arith.constant dense<0.000000e+00> : vector<24x128xf32>
    %22 = tpu.matmul %13, %21, %cst_3 {dimension_numbers = #tpu.dot_dimension_numbers<[1], [0], [0], [1], [0, 0, 1, 1], [], []>} : vector<24x128xf32>, vector<128x128xf32>, vector<24x128xf32> -> vector<24x128xf32>
    %23 = vector.extract_strided_slice %22 {offsets = [0, 0], sizes = [8, 128], strides = [1, 1]} : vector<24x128xf32> to vector<8x128xf32>
    %24 = vector.extract_strided_slice %22 {offsets = [8, 0], sizes = [8, 128], strides = [1, 1]} : vector<24x128xf32> to vector<8x128xf32>
    %25 = arith.addf %23, %24 : vector<8x128xf32>
    %26 = vector.extract_strided_slice %22 {offsets = [16, 0], sizes = [8, 128], strides = [1, 1]} : vector<24x128xf32> to vector<8x128xf32>
    %27 = arith.addf %25, %26 : vector<8x128xf32>
    %28 = vector.broadcast %17 : vector<1x128xi32> to vector<8x128xi32>
    %29 = arith.cmpi eq, %15, %28 : vector<8x128xi32>
    %cst_4 = arith.constant 0.000000e+00 : f32
    %30 = vector.broadcast %cst_4 : f32 to vector<8x128xf32>
    %31 = arith.select %29, %27, %30 : vector<8x128xi1>, vector<8x128xf32>
    %cst_5 = arith.constant dense<0.000000e+00> : vector<128xf32>
    %32 = vector.multi_reduction <add>, %31, %cst_5 [0] : vector<8x128xf32> to vector<128xf32>
    %33 = vector.shape_cast %32 : vector<128xf32> to vector<1x128xf32>
    %34 = vector.extract_strided_slice %12 {offsets = [1, 0], sizes = [1, 128], strides = [1, 1]} : vector<8x128xi32> to vector<1x128xi32>
    %35 = vector.extract_strided_slice %10 {offsets = [1, 0], sizes = [1, 128], strides = [1, 1]} : vector<8x128xi32> to vector<1x128xi32>
    %36 = vector.broadcast %34 : vector<1x128xi32> to vector<128x128xi32>
    %37 = arith.cmpi eq, %14, %36 : vector<128x128xi32>
    %38 = arith.extui %37 : vector<128x128xi1> to vector<128x128xi32>
    %39 = arith.sitofp %38 : vector<128x128xi32> to vector<128x128xf32>
    %cst_6 = arith.constant dense<0.000000e+00> : vector<24x128xf32>
    %40 = tpu.matmul %13, %39, %cst_6 {dimension_numbers = #tpu.dot_dimension_numbers<[1], [0], [0], [1], [0, 0, 1, 1], [], []>} : vector<24x128xf32>, vector<128x128xf32>, vector<24x128xf32> -> vector<24x128xf32>
    %41 = vector.extract_strided_slice %40 {offsets = [0, 0], sizes = [8, 128], strides = [1, 1]} : vector<24x128xf32> to vector<8x128xf32>
    %42 = vector.extract_strided_slice %40 {offsets = [8, 0], sizes = [8, 128], strides = [1, 1]} : vector<24x128xf32> to vector<8x128xf32>
    %43 = arith.addf %41, %42 : vector<8x128xf32>
    %44 = vector.extract_strided_slice %40 {offsets = [16, 0], sizes = [8, 128], strides = [1, 1]} : vector<24x128xf32> to vector<8x128xf32>
    %45 = arith.addf %43, %44 : vector<8x128xf32>
    %46 = vector.broadcast %35 : vector<1x128xi32> to vector<8x128xi32>
    %47 = arith.cmpi eq, %15, %46 : vector<8x128xi32>
    %cst_7 = arith.constant 0.000000e+00 : f32
    %48 = vector.broadcast %cst_7 : f32 to vector<8x128xf32>
    %49 = arith.select %47, %45, %48 : vector<8x128xi1>, vector<8x128xf32>
    %cst_8 = arith.constant dense<0.000000e+00> : vector<128xf32>
    %50 = vector.multi_reduction <add>, %49, %cst_8 [0] : vector<8x128xf32> to vector<128xf32>
    %51 = vector.shape_cast %50 : vector<128xf32> to vector<1x128xf32>
    %52 = vector.extract_strided_slice %12 {offsets = [2, 0], sizes = [1, 128], strides = [1, 1]} : vector<8x128xi32> to vector<1x128xi32>
    %53 = vector.extract_strided_slice %10 {offsets = [2, 0], sizes = [1, 128], strides = [1, 1]} : vector<8x128xi32> to vector<1x128xi32>
    %54 = vector.broadcast %52 : vector<1x128xi32> to vector<128x128xi32>
    %55 = arith.cmpi eq, %14, %54 : vector<128x128xi32>
    %56 = arith.extui %55 : vector<128x128xi1> to vector<128x128xi32>
    %57 = arith.sitofp %56 : vector<128x128xi32> to vector<128x128xf32>
    %cst_9 = arith.constant dense<0.000000e+00> : vector<24x128xf32>
    %58 = tpu.matmul %13, %57, %cst_9 {dimension_numbers = #tpu.dot_dimension_numbers<[1], [0], [0], [1], [0, 0, 1, 1], [], []>} : vector<24x128xf32>, vector<128x128xf32>, vector<24x128xf32> -> vector<24x128xf32>
    %59 = vector.extract_strided_slice %58 {offsets = [0, 0], sizes = [8, 128], strides = [1, 1]} : vector<24x128xf32> to vector<8x128xf32>
    %60 = vector.extract_strided_slice %58 {offsets = [8, 0], sizes = [8, 128], strides = [1, 1]} : vector<24x128xf32> to vector<8x128xf32>
    %61 = arith.addf %59, %60 : vector<8x128xf32>
    %62 = vector.extract_strided_slice %58 {offsets = [16, 0], sizes = [8, 128], strides = [1, 1]} : vector<24x128xf32> to vector<8x128xf32>
    %63 = arith.addf %61, %62 : vector<8x128xf32>
    %64 = vector.broadcast %53 : vector<1x128xi32> to vector<8x128xi32>
    %65 = arith.cmpi eq, %15, %64 : vector<8x128xi32>
    %cst_10 = arith.constant 0.000000e+00 : f32
    %66 = vector.broadcast %cst_10 : f32 to vector<8x128xf32>
    %67 = arith.select %65, %63, %66 : vector<8x128xi1>, vector<8x128xf32>
    %cst_11 = arith.constant dense<0.000000e+00> : vector<128xf32>
    %68 = vector.multi_reduction <add>, %67, %cst_11 [0] : vector<8x128xf32> to vector<128xf32>
    %69 = vector.shape_cast %68 : vector<128xf32> to vector<1x128xf32>
    %70 = vector.extract_strided_slice %12 {offsets = [3, 0], sizes = [1, 128], strides = [1, 1]} : vector<8x128xi32> to vector<1x128xi32>
    %71 = vector.extract_strided_slice %10 {offsets = [3, 0], sizes = [1, 128], strides = [1, 1]} : vector<8x128xi32> to vector<1x128xi32>
    %72 = vector.broadcast %70 : vector<1x128xi32> to vector<128x128xi32>
    %73 = arith.cmpi eq, %14, %72 : vector<128x128xi32>
    %74 = arith.extui %73 : vector<128x128xi1> to vector<128x128xi32>
    %75 = arith.sitofp %74 : vector<128x128xi32> to vector<128x128xf32>
    %cst_12 = arith.constant dense<0.000000e+00> : vector<24x128xf32>
    %76 = tpu.matmul %13, %75, %cst_12 {dimension_numbers = #tpu.dot_dimension_numbers<[1], [0], [0], [1], [0, 0, 1, 1], [], []>} : vector<24x128xf32>, vector<128x128xf32>, vector<24x128xf32> -> vector<24x128xf32>
    %77 = vector.extract_strided_slice %76 {offsets = [0, 0], sizes = [8, 128], strides = [1, 1]} : vector<24x128xf32> to vector<8x128xf32>
    %78 = vector.extract_strided_slice %76 {offsets = [8, 0], sizes = [8, 128], strides = [1, 1]} : vector<24x128xf32> to vector<8x128xf32>
    %79 = arith.addf %77, %78 : vector<8x128xf32>
    %80 = vector.extract_strided_slice %76 {offsets = [16, 0], sizes = [8, 128], strides = [1, 1]} : vector<24x128xf32> to vector<8x128xf32>
    %81 = arith.addf %79, %80 : vector<8x128xf32>
    %82 = vector.broadcast %71 : vector<1x128xi32> to vector<8x128xi32>
    %83 = arith.cmpi eq, %15, %82 : vector<8x128xi32>
    %cst_13 = arith.constant 0.000000e+00 : f32
    %84 = vector.broadcast %cst_13 : f32 to vector<8x128xf32>
    %85 = arith.select %83, %81, %84 : vector<8x128xi1>, vector<8x128xf32>
    %cst_14 = arith.constant dense<0.000000e+00> : vector<128xf32>
    %86 = vector.multi_reduction <add>, %85, %cst_14 [0] : vector<8x128xf32> to vector<128xf32>
    %87 = vector.shape_cast %86 : vector<128xf32> to vector<1x128xf32>
    %88 = vector.extract_strided_slice %12 {offsets = [4, 0], sizes = [1, 128], strides = [1, 1]} : vector<8x128xi32> to vector<1x128xi32>
    %89 = vector.extract_strided_slice %10 {offsets = [4, 0], sizes = [1, 128], strides = [1, 1]} : vector<8x128xi32> to vector<1x128xi32>
    %90 = vector.broadcast %88 : vector<1x128xi32> to vector<128x128xi32>
    %91 = arith.cmpi eq, %14, %90 : vector<128x128xi32>
    %92 = arith.extui %91 : vector<128x128xi1> to vector<128x128xi32>
    %93 = arith.sitofp %92 : vector<128x128xi32> to vector<128x128xf32>
    %cst_15 = arith.constant dense<0.000000e+00> : vector<24x128xf32>
    %94 = tpu.matmul %13, %93, %cst_15 {dimension_numbers = #tpu.dot_dimension_numbers<[1], [0], [0], [1], [0, 0, 1, 1], [], []>} : vector<24x128xf32>, vector<128x128xf32>, vector<24x128xf32> -> vector<24x128xf32>
    %95 = vector.extract_strided_slice %94 {offsets = [0, 0], sizes = [8, 128], strides = [1, 1]} : vector<24x128xf32> to vector<8x128xf32>
    %96 = vector.extract_strided_slice %94 {offsets = [8, 0], sizes = [8, 128], strides = [1, 1]} : vector<24x128xf32> to vector<8x128xf32>
    %97 = arith.addf %95, %96 : vector<8x128xf32>
    %98 = vector.extract_strided_slice %94 {offsets = [16, 0], sizes = [8, 128], strides = [1, 1]} : vector<24x128xf32> to vector<8x128xf32>
    %99 = arith.addf %97, %98 : vector<8x128xf32>
    %100 = vector.broadcast %89 : vector<1x128xi32> to vector<8x128xi32>
    %101 = arith.cmpi eq, %15, %100 : vector<8x128xi32>
    %cst_16 = arith.constant 0.000000e+00 : f32
    %102 = vector.broadcast %cst_16 : f32 to vector<8x128xf32>
    %103 = arith.select %101, %99, %102 : vector<8x128xi1>, vector<8x128xf32>
    %cst_17 = arith.constant dense<0.000000e+00> : vector<128xf32>
    %104 = vector.multi_reduction <add>, %103, %cst_17 [0] : vector<8x128xf32> to vector<128xf32>
    %105 = vector.shape_cast %104 : vector<128xf32> to vector<1x128xf32>
    %106 = vector.extract_strided_slice %12 {offsets = [5, 0], sizes = [1, 128], strides = [1, 1]} : vector<8x128xi32> to vector<1x128xi32>
    %107 = vector.extract_strided_slice %10 {offsets = [5, 0], sizes = [1, 128], strides = [1, 1]} : vector<8x128xi32> to vector<1x128xi32>
    %108 = vector.broadcast %106 : vector<1x128xi32> to vector<128x128xi32>
    %109 = arith.cmpi eq, %14, %108 : vector<128x128xi32>
    %110 = arith.extui %109 : vector<128x128xi1> to vector<128x128xi32>
    %111 = arith.sitofp %110 : vector<128x128xi32> to vector<128x128xf32>
    %cst_18 = arith.constant dense<0.000000e+00> : vector<24x128xf32>
    %112 = tpu.matmul %13, %111, %cst_18 {dimension_numbers = #tpu.dot_dimension_numbers<[1], [0], [0], [1], [0, 0, 1, 1], [], []>} : vector<24x128xf32>, vector<128x128xf32>, vector<24x128xf32> -> vector<24x128xf32>
    %113 = vector.extract_strided_slice %112 {offsets = [0, 0], sizes = [8, 128], strides = [1, 1]} : vector<24x128xf32> to vector<8x128xf32>
    %114 = vector.extract_strided_slice %112 {offsets = [8, 0], sizes = [8, 128], strides = [1, 1]} : vector<24x128xf32> to vector<8x128xf32>
    %115 = arith.addf %113, %114 : vector<8x128xf32>
    %116 = vector.extract_strided_slice %112 {offsets = [16, 0], sizes = [8, 128], strides = [1, 1]} : vector<24x128xf32> to vector<8x128xf32>
    %117 = arith.addf %115, %116 : vector<8x128xf32>
    %118 = vector.broadcast %107 : vector<1x128xi32> to vector<8x128xi32>
    %119 = arith.cmpi eq, %15, %118 : vector<8x128xi32>
    %cst_19 = arith.constant 0.000000e+00 : f32
    %120 = vector.broadcast %cst_19 : f32 to vector<8x128xf32>
    %121 = arith.select %119, %117, %120 : vector<8x128xi1>, vector<8x128xf32>
    %cst_20 = arith.constant dense<0.000000e+00> : vector<128xf32>
    %122 = vector.multi_reduction <add>, %121, %cst_20 [0] : vector<8x128xf32> to vector<128xf32>
    %123 = vector.shape_cast %122 : vector<128xf32> to vector<1x128xf32>
    %124 = vector.extract_strided_slice %12 {offsets = [6, 0], sizes = [1, 128], strides = [1, 1]} : vector<8x128xi32> to vector<1x128xi32>
    %125 = vector.extract_strided_slice %10 {offsets = [6, 0], sizes = [1, 128], strides = [1, 1]} : vector<8x128xi32> to vector<1x128xi32>
    %126 = vector.broadcast %124 : vector<1x128xi32> to vector<128x128xi32>
    %127 = arith.cmpi eq, %14, %126 : vector<128x128xi32>
    %128 = arith.extui %127 : vector<128x128xi1> to vector<128x128xi32>
    %129 = arith.sitofp %128 : vector<128x128xi32> to vector<128x128xf32>
    %cst_21 = arith.constant dense<0.000000e+00> : vector<24x128xf32>
    %130 = tpu.matmul %13, %129, %cst_21 {dimension_numbers = #tpu.dot_dimension_numbers<[1], [0], [0], [1], [0, 0, 1, 1], [], []>} : vector<24x128xf32>, vector<128x128xf32>, vector<24x128xf32> -> vector<24x128xf32>
    %131 = vector.extract_strided_slice %130 {offsets = [0, 0], sizes = [8, 128], strides = [1, 1]} : vector<24x128xf32> to vector<8x128xf32>
    %132 = vector.extract_strided_slice %130 {offsets = [8, 0], sizes = [8, 128], strides = [1, 1]} : vector<24x128xf32> to vector<8x128xf32>
    %133 = arith.addf %131, %132 : vector<8x128xf32>
    %134 = vector.extract_strided_slice %130 {offsets = [16, 0], sizes = [8, 128], strides = [1, 1]} : vector<24x128xf32> to vector<8x128xf32>
    %135 = arith.addf %133, %134 : vector<8x128xf32>
    %136 = vector.broadcast %125 : vector<1x128xi32> to vector<8x128xi32>
    %137 = arith.cmpi eq, %15, %136 : vector<8x128xi32>
    %cst_22 = arith.constant 0.000000e+00 : f32
    %138 = vector.broadcast %cst_22 : f32 to vector<8x128xf32>
    %139 = arith.select %137, %135, %138 : vector<8x128xi1>, vector<8x128xf32>
    %cst_23 = arith.constant dense<0.000000e+00> : vector<128xf32>
    %140 = vector.multi_reduction <add>, %139, %cst_23 [0] : vector<8x128xf32> to vector<128xf32>
    %141 = vector.shape_cast %140 : vector<128xf32> to vector<1x128xf32>
    %142 = vector.extract_strided_slice %12 {offsets = [7, 0], sizes = [1, 128], strides = [1, 1]} : vector<8x128xi32> to vector<1x128xi32>
    %143 = vector.extract_strided_slice %10 {offsets = [7, 0], sizes = [1, 128], strides = [1, 1]} : vector<8x128xi32> to vector<1x128xi32>
    %144 = vector.broadcast %142 : vector<1x128xi32> to vector<128x128xi32>
    %145 = arith.cmpi eq, %14, %144 : vector<128x128xi32>
    %146 = arith.extui %145 : vector<128x128xi1> to vector<128x128xi32>
    %147 = arith.sitofp %146 : vector<128x128xi32> to vector<128x128xf32>
    %cst_24 = arith.constant dense<0.000000e+00> : vector<24x128xf32>
    %148 = tpu.matmul %13, %147, %cst_24 {dimension_numbers = #tpu.dot_dimension_numbers<[1], [0], [0], [1], [0, 0, 1, 1], [], []>} : vector<24x128xf32>, vector<128x128xf32>, vector<24x128xf32> -> vector<24x128xf32>
    %149 = vector.extract_strided_slice %148 {offsets = [0, 0], sizes = [8, 128], strides = [1, 1]} : vector<24x128xf32> to vector<8x128xf32>
    %150 = vector.extract_strided_slice %148 {offsets = [8, 0], sizes = [8, 128], strides = [1, 1]} : vector<24x128xf32> to vector<8x128xf32>
    %151 = arith.addf %149, %150 : vector<8x128xf32>
    %152 = vector.extract_strided_slice %148 {offsets = [16, 0], sizes = [8, 128], strides = [1, 1]} : vector<24x128xf32> to vector<8x128xf32>
    %153 = arith.addf %151, %152 : vector<8x128xf32>
    %154 = vector.broadcast %143 : vector<1x128xi32> to vector<8x128xi32>
    %155 = arith.cmpi eq, %15, %154 : vector<8x128xi32>
    %cst_25 = arith.constant 0.000000e+00 : f32
    %156 = vector.broadcast %cst_25 : f32 to vector<8x128xf32>
    %157 = arith.select %155, %153, %156 : vector<8x128xi1>, vector<8x128xf32>
    %cst_26 = arith.constant dense<0.000000e+00> : vector<128xf32>
    %158 = vector.multi_reduction <add>, %157, %cst_26 [0] : vector<8x128xf32> to vector<128xf32>
    %159 = vector.shape_cast %158 : vector<128xf32> to vector<1x128xf32>
    %160 = tpu.concatenate %33, %51, %69, %87, %105, %123, %141, %159 in 0 : vector<1x128xf32>, vector<1x128xf32>, vector<1x128xf32>, vector<1x128xf32>, vector<1x128xf32>, vector<1x128xf32>, vector<1x128xf32>, vector<1x128xf32> -> vector<8x128xf32>
    %c0_27 = arith.constant 0 : index
    %c0_28 = arith.constant 0 : index
    %161 = vector.load %arg3[%c0_27, %c0_28] : memref<8x128xf32, #tpu.memory_space<vmem>>, vector<8x128xf32>
    tpu.vector_store %arg3[%c0_27, %c0_28], %160 {strides = array<i32>} : memref<8x128xf32, #tpu.memory_space<vmem>>, vector<8x128xf32>,
    return
  }
  func.func @transform_0(%arg0: i32) -> (i32, i32) {
    %c0_i32 = arith.constant 0 : i32
    %c0_i32_0 = arith.constant 0 : i32
    return %arg0, %c0_i32 : i32, i32
  }
  func.func @transform_1(%arg0: i32) -> (i32, i32) {
    %c0_i32 = arith.constant 0 : i32
    %c0_i32_0 = arith.constant 0 : i32
    %c0_i32_1 = arith.constant 0 : i32
    return %c0_i32, %c0_i32_0 : i32, i32
  }
  func.func @transform_2(%arg0: i32) -> (i32, i32) {
    %c0_i32 = arith.constant 0 : i32
    %c0_i32_0 = arith.constant 0 : i32
    return %arg0, %c0_i32 : i32, i32
  }
}

</mosaic_0001>

<bundles_post_ra>
// kernel: tpu_custom_call.1
= control target key start
LH: loop header
LB: loop body
LE: loop exit
PB: predicated region body
PF: predicated region fallthrough
CT: control target
= control target key end

     0   :  { %7 = vsyncpa [#allocation3], 0  ;;  %s3601_s0 = inlined_call_operand.hbm [shape: f32[8,128], index: 0, kind: input, shape index: {}]   ;;  %s3602_s1 = inlined_call_operand.hbm [shape: f32[24,128], index: 1, kind: input, shape index: {}]   ;;  %s3603_s2 = inlined_call_operand.hbm [shape: f32[8,128], index: 2, kind: output, shape index: {}]  }
   0x1   :  { %8 = vsyncpa [#allocation6], 0 }
   0x2   :  { %9 = vsyncpa [#allocation4], 0  ;;  %s2310_s9 = smov [#allocation2]   ;;  %s2311_s11 = smov [#allocation5]  }
   0x3   :  { %s16_s10 = sshll.u32 %s2310_s9, 4  ;;  %s25_s12 = sshll.u32 %s2311_s11, 4  ;;  %s17_s10 = int_to_ptr.vmem [resolvable:$true] %s16_s10  ;;  %s2334_s12 = int_to_ptr.vmem [resolvable:$true] %s25_s12 }
   0x4   :  { %s2238_s15 = scalar_lea.hbm %s3601_s0, 128 }
   0x5   :  { %p2239_p0 = scmp.ne.s32.totalorder %s3601_s0, %s2238_s15  ;;  %p2242_p1 = scmp.lt.u32.totalorder %s2238_s15, %s3601_s0 }
   0x7   :  { %p2244_p2 = pnand %p2242_p1, %p2239_p0 }
   0x9   :  { %2247 = shalt.err (!%p2244_p2)
}
   0xa   :  { %s2248_s20 = scalar_lea.vmem %s17_s10, 128  ;;  %p2253_p4 = scmp.lt.s32.totalorder %s17_s10, %s17_s10 }
   0xb   :  { %p2249_p3 = scmp.ne.s32.totalorder %s17_s10, %s2248_s20  ;;  %p2254_p5 = scmp.lt.s32.totalorder %s2248_s20, %s2248_s20 }
   0xd   :  { %p2255_p6 = por %p2254_p5, %p2253_p4 }
   0xf   :  { %p2256_p7 = pnand %p2255_p6, %p2249_p3 }
  0x11   :  { %2259 = shalt.err (!%p2256_p7)
}
  0x12   :  { %19 = dma.hbm_to_vmem [thread:$0]  %s3601_s0, 128, %s17_s10, [#allocation3]  }
  0x13   :  { %s2260_s25 = scalar_lea.hbm %s3602_s1, 384 }
  0x14   :  { %p2261_p8 = scmp.ne.s32.totalorder %s3602_s1, %s2260_s25  ;;  %p2264_p9 = scmp.lt.u32.totalorder %s2260_s25, %s3602_s1 }
  0x16   :  { %p2266_p10 = pnand %p2264_p9, %p2261_p8 }
  0x18   :  { %2269 = shalt.err (!%p2266_p10)
}
  0x19   :  { %s2270_s30 = scalar_lea.vmem %s2334_s12, 384  ;;  %p2275_p12 = scmp.lt.s32.totalorder %s2334_s12, %s2334_s12 }
  0x1a   :  { %p2271_p11 = scmp.ne.s32.totalorder %s2334_s12, %s2270_s30  ;;  %p2276_p13 = scmp.lt.s32.totalorder %s2270_s30, %s2270_s30 }
  0x1c   :  { %p2277_p0 = por %p2276_p13, %p2275_p12 }
  0x1e   :  { %p2278_p1 = pnand %p2277_p0, %p2271_p11 }
  0x20   :  { %2281 = shalt.err (!%p2278_p1)
}
  0x21   :  { %s2312_s0 = smov 128   ;;  %s2313_s3 = smov 8  }
  0x22   :  { %31 = dma.hbm_to_vmem [thread:$0]  %s3602_s1, 384, %s2334_s12, [#allocation6], %s2312_s0, %s2312_s0, %s2313_s3  }
  0x23   :  { %2304 = dma.done.wait [#allocation3], 128  }
  0x24   :  { %2305 = vsyncadd [#allocation3], 4294967168 }
  0x25   :  { %2306 = dma.done.wait [#allocation6], 384  }
  0x26   :  { %2307 = vsyncadd [#allocation6], 4294966912  ;;  %v2314_v0 = vmov 0.0|0.0   ;;  %vm3604_vm0 = vmmov 0   ;;  %v2316_v1 = vmov 0.0   ;;  %v50_v2 = vlaneseq  ;;  %v38_v3 = vld [vmem:[#allocation2] sm:$0xff] }
  0x27   :  { %2002 = vmatprep.subr.bf16.mxu0 %v2314_v0  ;;  %2026 = vmatprep.subr.bf16.mxu1 %v2314_v0  ;;  %v39_v4 = vmul.f32 1000.0, %v38_v3  ;;  %v2317_v19 = vmov 1.0|1.0   ;;  %v2823_v53 = vld [vmem:[#allocation5] sm:$0xff]  ;;  %v3647_v57 = vmov 0  ;;  %v3650_v58 = vmov 0 }
  0x28   :  { %1706 = vmatprep.mubr.msk.f32.mxu0 %vm3604_vm0, %v2316_v1  ;;  %1747 = vmatprep.mubr.msk.f32.mxu1 %vm3604_vm0, %v2316_v1  ;;  %v2371_v6 = vshrl.u32 %v50_v2, 7  ;;  %v3658_v60 = vmov 0  ;;  %v3663_v61 = vmov 0  ;;  %v3667_v62 = vmov 0  ;;  %v2985_v2 = vld [vmem:[#allocation5 + $0x8] sm:$0xff]  ;;  %v3121_v47 = vld [vmem:[#allocation5 + $0x10] sm:$0xff] }
  0x29   :  { %v2228_v5 = vcvt.f32.s32 %v39_v4  ;;  %v3671_v63 = vmov 0  ;;  %v3675_v3 = vmov 0  ;;  %v3701_v43 = vmov 0  ;;  %s2318_s1 = smov [#allocation7]  }
  0x2a   :  { %v69_v8 = vsub.s32 0, %v2371_v6  ;;  %v215_v9 = vsub.s32 1, %v2371_v6  ;;  %v2381_v12 = vadd.s32 8, %v2371_v6  ;;  %v2384_v13 = vadd.s32 16, %v2371_v6  ;;  %s1256_s6 = sshll.u32 %s2318_s1, 4  ;;  %s1257_s6 = int_to_ptr.vmem [resolvable:$true] %s1256_s6 }
  0x2b   :  { %vm41_vm1 = vcmp.gt.s32.totalorder %v2228_v5, 0  ;;  %v2387_v14 = vadd.s32 24, %v2371_v6  ;;  %v2400_v17 = vadd.s32 32, %v2371_v6  ;;  %v2403_v18 = vadd.s32 40, %v2371_v6  ;;  %s2282_s7 = scalar_lea.vmem %s1257_s6, 128  ;;  %p2287_p3 = scmp.lt.s32.totalorder %s1257_s6, %s1257_s6 }
  0x2c   :  { %v42_v7 = vsel %vm41_vm1, %v2228_v5, 0  ;;  %v2430_v20 = vadd.s32 48, %v2371_v6  ;;  %v2433_v21 = vadd.s32 56, %v2371_v6  ;;  %v361_v22 = vsub.s32 2, %v2371_v6  ;;  %p2283_p2 = scmp.ne.s32.totalorder %s1257_s6, %s2282_s7  ;;  %p2288_p4 = scmp.lt.s32.totalorder %s2282_s7, %s2282_s7 }
  0x2d   :  { %vm43_vm2 = vcmp.lt.s32.totalorder %v42_v7, 1000  ;;  %v507_v23 = vsub.s32 3, %v2371_v6  ;;  %v653_v24 = vsub.s32 4, %v2371_v6  ;;  %v799_v25 = vsub.s32 5, %v2371_v6 }
  0x2e   :  { %v2375_v10 = vsel %vm43_vm2, %v42_v7, 1000  ;;  %v945_v26 = vsub.s32 6, %v2371_v6  ;;  %v1091_v27 = vsub.s32 7, %v2371_v6  ;;  %v2452_v28 = vadd.s32 64, %v2371_v6  ;;  %p2289_p5 = por %p2288_p4, %p2287_p3 }
  0x2f   :  { %v2378_v11 = vand.u32 127, %v2375_v10  ;;  %v2464_v30 = vadd.s32 72, %v2371_v6  ;;  %v2467_v31 = vadd.s32 80, %v2371_v6  ;;  %v2474_v32 = vadd.s32 88, %v2371_v6 }
  0x30   :  { %v2477_v33 = vadd.s32 96, %v2371_v6  ;;  %v2491_v36 = vadd.s32 104, %v2371_v6  ;;  %v2494_v37 = vadd.s32 112, %v2371_v6  ;;  %v2522_v41 = vadd.s32 120, %v2371_v6  ;;  %p2290_p6 = pnand %p2289_p5, %p2283_p2 }
  0x31   :  { %v2392_v15 = vrot.slane %v2378_v11, %v69_v8  ;;  %v2397_v16 = vrot.slane %v2378_v11, %v215_v9  ;;  %v2482_v34 = vrot.slane %v2378_v11, %v361_v22  ;;  %v2487_v35 = vrot.slane %v2378_v11, %v507_v23 }
  0x32   :  { %v2499_v38 = vrot.slane %v2378_v11, %v653_v24  ;;  %v2504_v39 = vrot.slane %v2378_v11, %v799_v25  ;;  %v2509_v40 = vrot.slane %v2378_v11, %v945_v26  ;;  %v2527_v42 = vrot.slane %v2378_v11, %v1091_v27 }
  0x33   :  { %vm71_vm3 = vcmp.eq.s32.totalorder %v2371_v6, %v2392_v15  ;;  %vm72_vm4 = vcmp.eq.s32.totalorder %v2381_v12, %v2392_v15  ;;  %vm217_vm5 = vcmp.eq.s32.totalorder %v2371_v6, %v2397_v16  ;;  %vm218_vm6 = vcmp.eq.s32.totalorder %v2381_v12, %v2397_v16 }
  0x34   :  { %vm2003_vm7 = vmpackc.low %vm72_vm4, %vm71_vm3  ;;  %vm73_vm8 = vcmp.eq.s32.totalorder %v2384_v13, %v2392_v15  ;;  %vm74_vm9 = vcmp.eq.s32.totalorder %v2387_v14, %v2392_v15  ;;  %vm219_vm10 = vcmp.eq.s32.totalorder %v2384_v13, %v2397_v16  ;;  %vm220_vm11 = vcmp.eq.s32.totalorder %v2387_v14, %v2397_v16 }
  0x35   :  { %2004 = vmatpush3.bf16.msk.msra.mxu0 %vm2003_vm7, %v2317_v19  ;;  %vm2027_vm12 = vmpackc.low %vm218_vm6, %vm217_vm5  ;;  %vm75_vm15 = vcmp.eq.s32.totalorder %v2400_v17, %v2392_v15  ;;  %vm76_vm1 = vcmp.eq.s32.totalorder %v2403_v18, %v2392_v15  ;;  %vm221_vm2 = vcmp.eq.s32.totalorder %v2400_v17, %v2397_v16  ;;  %vm222_vm3 = vcmp.eq.s32.totalorder %v2403_v18, %v2397_v16 }
  0x36   :  { %2028 = vmatpush3.bf16.msk.msra.mxu1 %vm2027_vm12, %v2317_v19  ;;  %2005 = vmatprep.subr.bf16.mxu0 %v2314_v0  ;;  %vm2006_vm13 = vmpackc.low %vm74_vm9, %vm73_vm8  ;;  %vm77_vm6 = vcmp.eq.s32.totalorder %v2430_v20, %v2392_v15  ;;  %vm78_vm7 = vcmp.eq.s32.totalorder %v2433_v21, %v2392_v15  ;;  %vm223_vm8 = vcmp.eq.s32.totalorder %v2430_v20, %v2397_v16  ;;  %v3681_v5 = vmov 0 }
  0x37   :  { %2029 = vmatprep.subr.bf16.mxu1 %v2314_v0  ;;  %vm2030_vm14 = vmpackc.low %vm220_vm11, %vm219_vm10  ;;  %vm224_vm9 = vcmp.eq.s32.totalorder %v2433_v21, %v2397_v16  ;;  %vm79_vm12 = vcmp.eq.s32.totalorder %v2452_v28, %v2392_v15  ;;  %vm365_vm0 = vcmp.eq.s32.totalorder %v2384_v13, %v2482_v34  ;;  %v3687_v11 = vmov 0 }
  0x38   :  { %vm2009_vm4 = vmpackc.low %vm76_vm1, %vm75_vm15  ;;  %vm226_vm15 = vcmp.eq.s32.totalorder %v2464_v30, %v2397_v16  ;;  %vm81_vm1 = vcmp.eq.s32.totalorder %v2467_v31, %v2392_v15  ;;  %v3707_v45 = vmov 0  ;;  %v3711_v46 = vmov 0 }
  0x39   :  { %2007 = vmatpush3.bf16.msk.msra.mxu0 %vm2006_vm13, %v2317_v19  ;;  %vm2455_vm5 = vmpackc.low %vm222_vm3, %vm221_vm2  ;;  %vm80_vm13 = vcmp.eq.s32.totalorder %v2464_v30, %v2392_v15  ;;  %vm82_vm2 = vcmp.eq.s32.totalorder %v2474_v32, %v2392_v15  ;;  %vm227_vm3 = vcmp.eq.s32.totalorder %v2467_v31, %v2397_v16  ;;  %v3715_v48 = vmov 0 }
  0x3a   :  { %2031 = vmatpush3.bf16.msk.msra.mxu1 %vm2030_vm14, %v2317_v19  ;;  %2008 = vmatprep.subr.bf16.mxu0 %v2314_v0  ;;  %vm2012_vm10 = vmpackc.low %vm78_vm7, %vm77_vm6  ;;  %vm225_vm14 = vcmp.eq.s32.totalorder %v2452_v28, %v2397_v16  ;;  %vm84_vm6 = vcmp.eq.s32.totalorder %v2491_v36, %v2392_v15  ;;  %vm229_vm7 = vcmp.eq.s32.totalorder %v2477_v33, %v2397_v16  ;;  %v3718_v49 = vmov 0 }
  0x3b   :  { %2032 = vmatprep.subr.bf16.mxu1 %v2314_v0  ;;  %vm2036_vm11 = vmpackc.low %vm224_vm9, %vm223_vm8  ;;  %vm801_vm9 = vcmp.eq.s32.totalorder %v2371_v6, %v2504_v39  ;;  %v3722_v50 = vmov 0  ;;  %v3724_v51 = vmov 0 }
  0x3c   :  { %vm2015_vm8 = vmpackc.low %vm80_vm13, %vm79_vm12  ;;  %vm232_vm13 = vcmp.eq.s32.totalorder %v2522_v41, %v2397_v16  ;;  %vm3620_vm12 = vcmp.eq.s32.totalorder %v2522_v41, %v2392_v15 }
  0x3d   :  { %2010 = vmatpush3.bf16.msk.msra.mxu0 %vm2009_vm4, %v2317_v19  ;;  %vm228_vm4 = vcmp.eq.s32.totalorder %v2474_v32, %v2397_v16 }
  0x3e   :  { %2034 = vmatpush3.bf16.msk.msra.mxu1 %vm2455_vm5, %v2317_v19  ;;  %2011 = vmatprep.subr.bf16.mxu0 %v2314_v0  ;;  %vm83_vm5 = vcmp.eq.s32.totalorder %v2477_v33, %v2392_v15 }
  0x3f   :  { %2035 = vmatprep.subr.bf16.mxu1 %v2314_v0 }
  0x41   :  { %2013 = vmatpush3.bf16.msk.msra.mxu0 %vm2012_vm10, %v2317_v19  ;;  %vm366_vm10 = vcmp.eq.s32.totalorder %v2387_v14, %v2482_v34 }
  0x42   :  { %2037 = vmatpush3.bf16.msk.msra.mxu1 %vm2036_vm11, %v2317_v19  ;;  %2014 = vmatprep.subr.bf16.mxu0 %v2314_v0  ;;  %vm2574_vm11 = vmpackc.low %vm226_vm15, %vm225_vm14  ;;  %vm511_vm15 = vcmp.eq.s32.totalorder %v2384_v13, %v2487_v35 }
  0x43   :  { %2038 = vmatprep.subr.bf16.mxu1 %v2314_v0 }
  0x45   :  { %2016 = vmatpush3.bf16.msk.msra.mxu0 %vm2015_vm8, %v2317_v19  ;;  %vm2617_vm8 = vmpackc.low %vm82_vm2, %vm81_vm1 }
  0x46   :  { %2040 = vmatpush3.bf16.msk.msra.mxu1 %vm2574_vm11, %v2317_v19  ;;  %2017 = vmatprep.subr.bf16.mxu0 %v2314_v0  ;;  %vm2638_vm1 = vmpackc.low %vm228_vm4, %vm227_vm3  ;;  %vm513_vm4 = vcmp.eq.s32.totalorder %v2400_v17, %v2487_v35  ;;  %vm655_vm3 = vcmp.eq.s32.totalorder %v2371_v6, %v2499_v38 }
  0x47   :  { %2041 = vmatprep.subr.bf16.mxu1 %v2314_v0 }
  0x49   :  { %2019 = vmatpush3.bf16.msk.msra.mxu0 %vm2617_vm8, %v2317_v19  ;;  %vm2687_vm8 = vmpackc.low %vm84_vm6, %vm83_vm5  ;;  %vm3616_vm5 = vcmp.eq.s32.totalorder %v2491_v36, %v2397_v16 }
  0x4a   :  { %2043 = vmatpush3.bf16.msk.msra.mxu1 %vm2638_vm1, %v2317_v19  ;;  %2020 = vmatprep.subr.bf16.mxu0 %v2314_v0  ;;  %vm2704_vm6 = vmpackc.low %vm3616_vm5, %vm229_vm7  ;;  %vm3619_vm5 = vcmp.eq.s32.totalorder %v2494_v37, %v2392_v15  ;;  %vm3666_vm7 = vcmp.eq.s32.totalorder %v2387_v14, %v2504_v39  ;;  %v3691_v15 = vmov 0 }
  0x4b   :  { %2044 = vmatprep.subr.bf16.mxu1 %v2314_v0  ;;  %vm2726_vm11 = vmpackc.low %vm3620_vm12, %vm3619_vm5  ;;  %vm3623_vm5 = vcmp.eq.s32.totalorder %v2494_v37, %v2397_v16  ;;  %vm3630_vm12 = vcmp.eq.s32.totalorder %v2371_v6, %v2487_v35  ;;  %v3695_v16 = vmov 0 }
  0x4c   :  { %vm2751_vm2 = vmpackc.low %vm232_vm13, %vm3623_vm5  ;;  %vm3626_vm13 = vcmp.eq.s32.totalorder %v2371_v6, %v2482_v34  ;;  %vm3627_vm5 = vcmp.eq.s32.totalorder %v2381_v12, %v2482_v34 }
  0x4d   :  { %2022 = vmatpush3.bf16.msk.msra.mxu0 %vm2687_vm8, %v2317_v19  ;;  %vm2773_vm1 = vmpackc.low %vm3627_vm5, %vm3626_vm13  ;;  %vm3631_vm13 = vcmp.eq.s32.totalorder %v2381_v12, %v2487_v35 }
  0x4e   :  { %2046 = vmatpush3.bf16.msk.msra.mxu1 %vm2704_vm6, %v2317_v19  ;;  %2023 = vmatprep.subr.bf16.mxu0 %v2314_v0  ;;  %vm2790_vm5 = vmpackc.low %vm3631_vm13, %vm3630_vm12  ;;  %vm3665_vm13 = vcmp.eq.s32.totalorder %v2384_v13, %v2504_v39 }
  0x4f   :  { %2047 = vmatprep.subr.bf16.mxu1 %v2314_v0  ;;  %vm2808_vm12 = vmpackc.low %vm366_vm10, %vm365_vm0  ;;  %vm3636_vm0 = vcmp.eq.s32.totalorder %v2387_v14, %v2487_v35 }
  0x50   :  { %vm2831_vm10 = vmpackc.low %vm3636_vm0, %vm511_vm15  ;;  %vm3639_vm15 = vcmp.eq.s32.totalorder %v2400_v17, %v2482_v34  ;;  %vm3640_vm0 = vcmp.eq.s32.totalorder %v2403_v18, %v2482_v34 }
  0x51   :  { %2025 = vmatpush3.bf16.msk.msra.mxu0 %vm2726_vm11, %v2317_v19  ;;  %vm2853_vm6 = vmpackc.low %vm3640_vm0, %vm3639_vm15  ;;  %vm3643_vm15 = vcmp.eq.s32.totalorder %v2403_v18, %v2487_v35  ;;  %vm3652_vm11 = vcmp.eq.s32.totalorder %v2430_v20, %v2482_v34 }
  0x52   :  { %2049 = vmatpush3.bf16.msk.msra.mxu1 %vm2751_vm2, %v2317_v19  ;;  %2050 = vmatprep.subr.bf16.mxu0 %v2314_v0  ;;  %vm2870_vm0 = vmpackc.low %vm3643_vm15, %vm513_vm4  ;;  %vm3646_vm4 = vcmp.eq.s32.totalorder %v2381_v12, %v2499_v38 }
  0x53   :  { %2074 = vmatprep.subr.bf16.mxu1 %v2314_v0  ;;  %vm2889_vm15 = vmpackc.low %vm3646_vm4, %vm655_vm3  ;;  %vm3649_vm3 = vcmp.eq.s32.totalorder %v2381_v12, %v2504_v39 }
  0x54   :  { %1707 = vmatmul.mubr.f32.vlgmr.msra.gmra.mrb[0].mxu0 %v2823_v53  ;;  %v3648_v57 = vsel %vm2889_vm15, 4294967295, %v3647_v57  ;;  %vm2911_vm4 = vmpackc.low %vm3649_vm3, %vm801_vm9  ;;  %vm3656_vm9 = vcmp.eq.s32.totalorder %v2384_v13, %v2499_v38  ;;  %vm3657_vm3 = vcmp.eq.s32.totalorder %v2387_v14, %v2499_v38  ;;  %vm3670_vm15 = vcmp.eq.s32.totalorder %v2403_v18, %v2499_v38 }
  0x55   :  { %1748 = vmatmul.mubr.f32.vlgmr.msra.gmra.mrb[0].mxu1 %v2823_v53  ;;  %2052 = vmatpush3.bf16.msk.msra.mxu0 %vm2773_vm1, %v2317_v19  ;;  %v3651_v58 = vsel %vm2911_vm4, 4294967295, %v3650_v58  ;;  %vm3653_vm1 = vcmp.eq.s32.totalorder %v2433_v21, %v2482_v34  ;;  %vm2935_vm2 = vmpackc.low %vm3657_vm3, %vm3656_vm9  ;;  %vm371_vm9 = vcmp.eq.s32.totalorder %v2452_v28, %v2482_v34  ;;  %vm372_vm3 = vcmp.eq.s32.totalorder %v2464_v30, %v2482_v34 }
  0x56   :  { %2076 = vmatpush3.bf16.msk.msra.mxu1 %vm2790_vm5, %v2317_v19  ;;  %2053 = vmatprep.subr.bf16.mxu0 %v2314_v0  ;;  %vm2925_vm14 = vmpackc.low %vm3653_vm1, %vm3652_vm11  ;;  %v3659_v60 = vsel %vm2935_vm2, 4294967295, %v3658_v60  ;;  %vm3660_vm5 = vmmov 0   ;;  %vm3661_vm11 = vcmp.eq.s32.totalorder %v2430_v20, %v2487_v35  ;;  %vm3662_vm1 = vcmp.eq.s32.totalorder %v2433_v21, %v2487_v35 }
  0x57   :  { %2077 = vmatprep.subr.bf16.mxu1 %v2314_v0  ;;  %1709 = vmatprep.mubr.msk.f32.mxu0 %vm3660_vm5, %v2316_v1  ;;  %vm2948_vm8 = vmpackc.low %vm3662_vm1, %vm3661_vm11  ;;  %vm517_vm11 = vcmp.eq.s32.totalorder %v2452_v28, %v2487_v35  ;;  %vm518_vm1 = vcmp.eq.s32.totalorder %v2464_v30, %v2487_v35  ;;  %vm3669_vm4 = vcmp.eq.s32.totalorder %v2400_v17, %v2499_v38 }
  0x58   :  { %v3664_v61 = vsel %vm2948_vm8, 4294967295, %v3663_v61  ;;  %vm2962_vm2 = vmpackc.low %vm3666_vm7, %vm3665_vm13  ;;  %1750 = vmatprep.mubr.msk.f32.mxu1 %vm3660_vm5, %v2316_v1  ;;  %vm3673_vm7 = vcmp.eq.s32.totalorder %v2400_v17, %v2504_v39  ;;  %vm3674_vm13 = vcmp.eq.s32.totalorder %v2403_v18, %v2504_v39 }
  0x59   :  { %v3668_v62 = vsel %vm2962_vm2, 4294967295, %v3667_v62  ;;  %vm2978_vm8 = vmpackc.low %vm3670_vm15, %vm3669_vm4  ;;  %2055 = vmatpush3.bf16.msk.msra.mxu0 %vm2808_vm12, %v2317_v19  ;;  %vm3679_vm12 = vcmp.eq.s32.totalorder %v2430_v20, %v2499_v38  ;;  %vm3680_vm4 = vcmp.eq.s32.totalorder %v2433_v21, %v2499_v38 }
  0x5a   :  { %v3672_v63 = vsel %vm2978_vm8, 4294967295, %v3671_v63  ;;  %vm2993_vm2 = vmpackc.low %vm3674_vm13, %vm3673_vm7  ;;  %2079 = vmatpush3.bf16.msk.msra.mxu1 %vm2831_vm10, %v2317_v19  ;;  %2056 = vmatprep.subr.bf16.mxu0 %v2314_v0  ;;  %vm373_vm10 = vcmp.eq.s32.totalorder %v2467_v31, %v2482_v34 }
  0x5b   :  { %v3676_v3 = vsel %vm2993_vm2, 4294967295, %v3675_v3  ;;  %vm3001_vm15 = vmpackc.low %vm372_vm3, %vm371_vm9  ;;  %2080 = vmatprep.subr.bf16.mxu1 %v2314_v0  ;;  %vm374_vm9 = vcmp.eq.s32.totalorder %v2474_v32, %v2482_v34  ;;  %vm3685_vm3 = vcmp.eq.s32.totalorder %v2430_v20, %v2504_v39  ;;  %vm3690_vm2 = vcmp.eq.s32.totalorder %v2464_v30, %v2499_v38 }
  0x5c   :  { %vm3011_vm7 = vmpackc.low %vm3680_vm4, %vm3679_vm12  ;;  %vm3686_vm12 = vcmp.eq.s32.totalorder %v2433_v21, %v2504_v39  ;;  %1710 = vmatmul.mubr.f32.gmra.mrb[0].mxu0 %v2985_v2 }
  0x5d   :  { %v3682_v5 = vsel %vm3011_vm7, 4294967295, %v3681_v5  ;;  %vm3016_vm13 = vmpackc.low %vm518_vm1, %vm517_vm11  ;;  %vm519_vm11 = vcmp.eq.s32.totalorder %v2467_v31, %v2487_v35  ;;  %vm520_vm1 = vcmp.eq.s32.totalorder %v2474_v32, %v2487_v35  ;;  %vm3689_vm7 = vcmp.eq.s32.totalorder %v2452_v28, %v2499_v38  ;;  %1751 = vmatmul.mubr.f32.gmra.mrb[0].mxu1 %v2985_v2  ;;  %2058 = vmatpush3.bf16.msk.msra.mxu0 %vm2853_vm6, %v2317_v19 }
  0x5e   :  { %vm3030_vm4 = vmpackc.low %vm3686_vm12, %vm3685_vm3  ;;  %vm3693_vm3 = vcmp.eq.s32.totalorder %v2452_v28, %v2504_v39  ;;  %vm3694_vm12 = vcmp.eq.s32.totalorder %v2464_v30, %v2504_v39  ;;  %2082 = vmatpush3.bf16.msk.msra.mxu1 %vm2870_vm0, %v2317_v19  ;;  %2059 = vmatprep.subr.bf16.mxu0 %v2314_v0  ;;  %vm3699_vm6 = vcmp.eq.s32.totalorder %v2467_v31, %v2499_v38 }
  0x5f   :  { %v3688_v11 = vsel %vm3030_vm4, 4294967295, %v3687_v11  ;;  %vm3045_vm8 = vmpackc.low %vm3690_vm2, %vm3689_vm7  ;;  %vm3700_vm7 = vcmp.eq.s32.totalorder %v2474_v32, %v2499_v38  ;;  %2083 = vmatprep.subr.bf16.mxu1 %v2314_v0  ;;  %1712 = vmatprep.mubr.msk.f32.mxu0 %vm3660_vm5, %v2316_v1 }
  0x60   :  { %v3692_v15 = vsel %vm3045_vm8, 4294967295, %v3691_v15  ;;  %vm3059_vm4 = vmpackc.low %vm3694_vm12, %vm3693_vm3  ;;  %vm3705_vm12 = vcmp.eq.s32.totalorder %v2467_v31, %v2504_v39  ;;  %1753 = vmatprep.mubr.msk.f32.mxu1 %vm3660_vm5, %v2316_v1 }
  0x61   :  { %v3696_v16 = vsel %vm3059_vm4, 4294967295, %v3695_v16  ;;  %vm3067_vm2 = vmpackc.low %vm374_vm9, %vm373_vm10  ;;  %vm375_vm10 = vcmp.eq.s32.totalorder %v2477_v33, %v2482_v34  ;;  %vm376_vm9 = vcmp.eq.s32.totalorder %v2491_v36, %v2482_v34  ;;  %vm3710_vm4 = vcmp.eq.s32.totalorder %v2491_v36, %v2499_v38  ;;  %2061 = vmatpush3.bf16.msk.msra.mxu0 %vm2925_vm14, %v2317_v19 }
  0x62   :  { %vm3077_vm3 = vmpackc.low %vm3700_vm7, %vm3699_vm6  ;;  %vm3706_vm6 = vcmp.eq.s32.totalorder %v2474_v32, %v2504_v39  ;;  %2062 = vmatprep.subr.bf16.mxu0 %v2314_v0 }
  0x63   :  { %v3702_v43 = vsel %vm3077_vm3, 4294967295, %v3701_v43  ;;  %vm3084_vm0 = vmpackc.low %vm520_vm1, %vm519_vm11  ;;  %vm521_vm11 = vcmp.eq.s32.totalorder %v2477_v33, %v2487_v35  ;;  %vm522_vm1 = vcmp.eq.s32.totalorder %v2491_v36, %v2487_v35  ;;  %vm3709_vm3 = vcmp.eq.s32.totalorder %v2477_v33, %v2499_v38 }
  0x64   :  { %vm3098_vm7 = vmpackc.low %vm3706_vm6, %vm3705_vm12  ;;  %vm3713_vm12 = vcmp.eq.s32.totalorder %v2477_v33, %v2504_v39  ;;  %vm3714_vm6 = vcmp.eq.s32.totalorder %v2491_v36, %v2504_v39  ;;  %1713 = vmatmul.mubr.f32.gmra.mrb[0].mxu0 %v3121_v47 }
  0x65   :  { %v3708_v45 = vsel %vm3098_vm7, 4294967295, %v3707_v45  ;;  %vm3114_vm8 = vmpackc.low %vm3710_vm4, %vm3709_vm3  ;;  %vm947_vm4 = vcmp.eq.s32.totalorder %v2371_v6, %v2509_v40  ;;  %vm3717_vm3 = vnez %v3664_v61  ;;  %1754 = vmatmul.mubr.f32.gmra.mrb[0].mxu1 %v3121_v47  ;;  %2064 = vmatpush3.bf16.msk.msra.mxu0 %vm3001_vm15, %v2317_v19  ;;  %vm3738_vm15 = vcmp.eq.s32.totalorder %v2384_v13, %v2509_v40 }
  0x66   :  { %v3712_v46 = vsel %vm3114_vm8, 4294967295, %v3711_v46  ;;  %vm3129_vm7 = vmpackc.low %vm3714_vm6, %vm3713_vm12  ;;  %2085 = vmatpush3.bf16.msk.msra.mxu1 %vm3717_vm3, %v2317_v19  ;;  %vm3720_vm8 = vcmp.eq.s32.totalorder %v2494_v37, %v2499_v38  ;;  %vm3721_vm12 = vcmp.eq.s32.totalorder %v2522_v41, %v2499_v38  ;;  %2065 = vmatprep.subr.bf16.mxu0 %v2314_v0 }
  0x67   :  { %v3716_v48 = vsel %vm3129_vm7, 4294967295, %v3715_v48  ;;  %vm3139_vm14 = vmpackc.low %vm376_vm9, %vm375_vm10  ;;  %vm1093_vm7 = vcmp.eq.s32.totalorder %v2371_v6, %v2527_v42  ;;  %2086 = vmatprep.subr.bf16.mxu1 %v2314_v0  ;;  %vm377_vm10 = vcmp.eq.s32.totalorder %v2494_v37, %v2482_v34  ;;  %vm378_vm9 = vcmp.eq.s32.totalorder %v2522_v41, %v2482_v34  ;;  %1788 = vmatprep.mubr.msk.f32.mxu0 %vm3660_vm5, %v2316_v1 }
  0x68   :  { %v3719_v49 = vsel %vm3139_vm14, 4294967295, %v3718_v49  ;;  %vm3149_vm6 = vmpackc.low %vm3721_vm12, %vm3720_vm8  ;;  %vm3726_vm8 = vcmp.eq.s32.totalorder %v2494_v37, %v2504_v39  ;;  %vm3727_vm12 = vcmp.eq.s32.totalorder %v2522_v41, %v2504_v39  ;;  %1829 = vmatprep.mubr.msk.f32.mxu1 %vm3660_vm5, %v2316_v1 }
  0x69   :  { %v3723_v50 = vsel %vm3149_vm6, 4294967295, %v3722_v50  ;;  %vm3156_vm3 = vmpackc.low %vm522_vm1, %vm521_vm11  ;;  %vm523_vm11 = vcmp.eq.s32.totalorder %v2494_v37, %v2487_v35  ;;  %vm524_vm1 = vcmp.eq.s32.totalorder %v2522_v41, %v2487_v35  ;;  %2067 = vmatpush3.bf16.msk.msra.mxu0 %vm3067_vm2, %v2317_v19  ;;  %vm3757_vm2 = vcmp.eq.s32.totalorder %v2433_v21, %v2509_v40 }
  0x6a   :  { %v3725_v51 = vsel %vm3156_vm3, 4294967295, %v3724_v51  ;;  %vm3170_vm6 = vmpackc.low %vm3727_vm12, %vm3726_vm8  ;;  %vm3730_vm3 = vcmp.eq.s32.totalorder %v2381_v12, %v2509_v40  ;;  %vm3733_vm8 = vcmp.eq.s32.totalorder %v2381_v12, %v2527_v42  ;;  %2088 = vmatpush3.bf16.msk.msra.mxu1 %vm3016_vm13, %v2317_v19  ;;  %vm3744_vm13 = vcmp.eq.s32.totalorder %v2384_v13, %v2527_v42  ;;  %2068 = vmatprep.subr.bf16.mxu0 %v2314_v0 }
  0x6b   :  { %vm3182_vm14 = vmpackc.low %vm3730_vm3, %vm947_vm4  ;;  %vm3739_vm3 = vcmp.eq.s32.totalorder %v2387_v14, %v2509_v40  ;;  %2089 = vmatprep.subr.bf16.mxu1 %v2314_v0  ;;  %v3754_v13 = vmov 0 }
  0x6c   :  { %vm3193_vm12 = vmpackc.low %vm3733_vm8, %vm1093_vm7 }
  0x6d   :  { %vm3201_vm4 = vmpackc.low %vm378_vm9, %vm377_vm10  ;;  %vm3745_vm10 = vcmp.eq.s32.totalorder %v2387_v14, %v2527_v42  ;;  %v3758_v14 = vmov 0 }
  0x6e   :  { %vm3211_vm7 = vmpackc.low %vm3739_vm3, %vm3738_vm15  ;;  %vm3752_vm3 = vcmp.eq.s32.totalorder %v2400_v17, %v2527_v42  ;;  %2091 = vmatpush3.bf16.msk.msra.mxu1 %vm3084_vm0, %v2317_v19  ;;  %vm3761_vm0 = vcmp.eq.s32.totalorder %v2433_v21, %v2527_v42 }
  0x6f   :  { %vm3216_vm8 = vmpackc.low %vm524_vm1, %vm523_vm11  ;;  %vm3748_vm11 = vcmp.eq.s32.totalorder %v2400_v17, %v2509_v40  ;;  %vm3749_vm1 = vcmp.eq.s32.totalorder %v2403_v18, %v2509_v40  ;;  %2092 = vmatprep.subr.bf16.mxu1 %v2314_v0  ;;  %v3762_v17 = vmov 0 }
  0x70   :  { %vm3228_vm9 = vmpackc.low %vm3745_vm10, %vm3744_vm13  ;;  %vm3753_vm13 = vcmp.eq.s32.totalorder %v2403_v18, %v2527_v42  ;;  %v3766_v18 = vmov 0 }
  0x71   :  { %vm3240_vm15 = vmpackc.low %vm3749_vm1, %vm3748_vm11  ;;  %vm3756_vm11 = vcmp.eq.s32.totalorder %v2430_v20, %v2509_v40 }
  0x72   :  { %vm3253_vm10 = vmpackc.low %vm3753_vm13, %vm3752_vm3  ;;  %vm3760_vm3 = vcmp.eq.s32.totalorder %v2430_v20, %v2527_v42  ;;  %v3771_v20 = vmov 0 }
  0x73   :  { %v3755_v13 = vsel %vm3253_vm10, 4294967295, %v3754_v13  ;;  %vm3267_vm1 = vmpackc.low %vm3757_vm2, %vm3756_vm11  ;;  %vm3764_vm10 = vcmp.eq.s32.totalorder %v2452_v28, %v2509_v40  ;;  %vm3765_vm11 = vcmp.eq.s32.totalorder %v2464_v30, %v2509_v40 }
  0x74   :  { %v3759_v14 = vsel %vm3267_vm1, 4294967295, %v3758_v14  ;;  %vm3278_vm13 = vmpackc.low %vm3761_vm0, %vm3760_vm3  ;;  %vm3768_vm1 = vnez %v3719_v49  ;;  %vm3769_vm3 = vcmp.eq.s32.totalorder %v2452_v28, %v2527_v42  ;;  %vm3770_vm0 = vcmp.eq.s32.totalorder %v2464_v30, %v2527_v42 }
  0x75   :  { %v3763_v17 = vsel %vm3278_vm13, 4294967295, %v3762_v17  ;;  %vm3288_vm2 = vmpackc.low %vm3765_vm11, %vm3764_vm10  ;;  %2070 = vmatpush3.bf16.msk.msra.mxu0 %vm3768_vm1, %v2317_v19  ;;  %vm3773_vm10 = vnez %v3725_v51  ;;  %vm3774_vm11 = vcmp.eq.s32.totalorder %v2467_v31, %v2509_v40  ;;  %vm3775_vm1 = vcmp.eq.s32.totalorder %v2474_v32, %v2509_v40 }
  0x76   :  { %v3767_v18 = vsel %vm3288_vm2, 4294967295, %v3766_v18  ;;  %vm3301_vm13 = vmpackc.low %vm3770_vm0, %vm3769_vm3  ;;  %2094 = vmatpush3.bf16.msk.msra.mxu1 %vm3773_vm10, %v2317_v19  ;;  %2071 = vmatprep.subr.bf16.mxu0 %v2314_v0  ;;  %vm3778_vm3 = vcmp.eq.s32.totalorder %v2467_v31, %v2527_v42  ;;  %vm3779_vm0 = vcmp.eq.s32.totalorder %v2474_v32, %v2527_v42  ;;  %v3780_v28 = vmov 0 }
  0x77   :  { %v3772_v20 = vsel %vm3301_vm13, 4294967295, %v3771_v20  ;;  %vm3315_vm2 = vmpackc.low %vm3775_vm1, %vm3774_vm11  ;;  %2095 = vmatprep.subr.bf16.mxu1 %v2314_v0  ;;  %vm3782_vm13 = vcmp.eq.s32.totalorder %v2477_v33, %v2509_v40  ;;  %vm3783_vm11 = vcmp.eq.s32.totalorder %v2491_v36, %v2509_v40 }
  0x78   :  { %vm3326_vm10 = vmpackc.low %vm3779_vm0, %vm3778_vm3  ;;  %vm3786_vm3 = vcmp.eq.s32.totalorder %v2477_v33, %v2527_v42  ;;  %vm3787_vm0 = vcmp.eq.s32.totalorder %v2491_v36, %v2527_v42 }
  0x79   :  { %v3781_v28 = vsel %vm3326_vm10, 4294967295, %v3780_v28  ;;  %vm3336_vm1 = vmpackc.low %vm3783_vm11, %vm3782_vm13  ;;  %2073 = vmatpush3.bf16.msk.msra.mxu0 %vm3201_vm4, %v2317_v19  ;;  %vm3790_vm13 = vcmp.eq.s32.totalorder %v2494_v37, %v2509_v40  ;;  %vm3791_vm4 = vcmp.eq.s32.totalorder %v2522_v41, %v2509_v40 }
  0x7a   :  { %vm3349_vm10 = vmpackc.low %vm3787_vm0, %vm3786_vm3  ;;  %2097 = vmatpush3.bf16.msk.msra.mxu1 %vm3216_vm8, %v2317_v19  ;;  %2098 = vmatprep.subr.bf16.mxu0 %v2314_v0  ;;  %vm3794_vm3 = vcmp.eq.s32.totalorder %v2494_v37, %v2527_v42  ;;  %vm3795_vm8 = vcmp.eq.s32.totalorder %v2522_v41, %v2527_v42 }
  0x7b   :  { %vm3363_vm11 = vmpackc.low %vm3791_vm4, %vm3790_vm13  ;;  %2122 = vmatprep.subr.bf16.mxu1 %v2314_v0  ;;  %vm3798_vm13 = vnez %v3648_v57  ;;  %vm3799_vm4 = vnez %v3651_v58 }
  0x7c   :  { %vm3374_vm0 = vmpackc.low %vm3795_vm8, %vm3794_vm3  ;;  %1789 = vmatmul.mubr.f32.vlgmr.msra.gmra.mrb[2].mxu0 %v2823_v53  ;;  %vm3800_vm3 = vnez %v3659_v60  ;;  %vm3801_vm8 = vnez %v3668_v62 }
  0x7d   :  { %1830 = vmatmul.mubr.f32.vlgmr.msra.gmra.mrb[2].mxu1 %v2823_v53  ;;  %2100 = vmatpush3.bf16.msk.msra.mxu0 %vm3798_vm13, %v2317_v19  ;;  %vm3802_vm13 = vnez %v3672_v63 }
  0x7e   :  { %2124 = vmatpush3.bf16.msk.msra.mxu1 %vm3799_vm4, %v2317_v19  ;;  %2101 = vmatprep.subr.bf16.mxu0 %v2314_v0  ;;  %vm3803_vm4 = vnez %v3676_v3 }
  0x7f   :  { %2125 = vmatprep.subr.bf16.mxu1 %v2314_v0  ;;  %1791 = vmatprep.mubr.msk.f32.mxu0 %vm3660_vm5, %v2316_v1 }
  0x80   :  { %1832 = vmatprep.mubr.msk.f32.mxu1 %vm3660_vm5, %v2316_v1 }
  0x81   :  { %2103 = vmatpush3.bf16.msk.msra.mxu0 %vm3800_vm3, %v2317_v19  ;;  %vm3804_vm3 = vnez %v3682_v5 }
  0x82   :  { %2127 = vmatpush3.bf16.msk.msra.mxu1 %vm3801_vm8, %v2317_v19  ;;  %2104 = vmatprep.subr.bf16.mxu0 %v2314_v0  ;;  %vm3805_vm8 = vnez %v3688_v11 }
  0x83   :  { %2128 = vmatprep.subr.bf16.mxu1 %v2314_v0 }
  0x84   :  { %1792 = vmatmul.mubr.f32.gmra.mrb[2].mxu0 %v2985_v2 }
  0x85   :  { %1833 = vmatmul.mubr.f32.gmra.mrb[2].mxu1 %v2985_v2  ;;  %2106 = vmatpush3.bf16.msk.msra.mxu0 %vm3802_vm13, %v2317_v19  ;;  %vm3806_vm13 = vnez %v3692_v15 }
  0x86   :  { %2130 = vmatpush3.bf16.msk.msra.mxu1 %vm3803_vm4, %v2317_v19  ;;  %2107 = vmatprep.subr.bf16.mxu0 %v2314_v0  ;;  %vm3807_vm4 = vnez %v3696_v16 }
  0x87   :  { %2131 = vmatprep.subr.bf16.mxu1 %v2314_v0  ;;  %1794 = vmatprep.mubr.msk.f32.mxu0 %vm3660_vm5, %v2316_v1 }
  0x88   :  { %1835 = vmatprep.mubr.msk.f32.mxu1 %vm3660_vm5, %v2316_v1 }
  0x89   :  { %2109 = vmatpush3.bf16.msk.msra.mxu0 %vm3804_vm3, %v2317_v19  ;;  %vm3808_vm3 = vnez %v3702_v43 }
  0x8a   :  { %2133 = vmatpush3.bf16.msk.msra.mxu1 %vm3805_vm8, %v2317_v19  ;;  %2110 = vmatprep.subr.bf16.mxu0 %v2314_v0  ;;  %vm3809_vm8 = vnez %v3708_v45 }
  0x8b   :  { %2134 = vmatprep.subr.bf16.mxu1 %v2314_v0 }
  0x8c   :  { %1795 = vmatmul.mubr.f32.gmra.mrb[2].mxu0 %v3121_v47 }
  0x8d   :  { %1836 = vmatmul.mubr.f32.gmra.mrb[2].mxu1 %v3121_v47  ;;  %2112 = vmatpush3.bf16.msk.msra.mxu0 %vm3806_vm13, %v2317_v19  ;;  %vm3810_vm13 = vnez %v3712_v46 }
  0x8e   :  { %2136 = vmatpush3.bf16.msk.msra.mxu1 %vm3807_vm4, %v2317_v19  ;;  %2113 = vmatprep.subr.bf16.mxu0 %v2314_v0  ;;  %vm3811_vm4 = vnez %v3716_v48 }
  0x8f   :  { %2137 = vmatprep.subr.bf16.mxu1 %v2314_v0  ;;  %1870 = vmatprep.mubr.msk.f32.mxu0 %vm3660_vm5, %v2316_v1 }
  0x90   :  { %1911 = vmatprep.mubr.msk.f32.mxu1 %vm3660_vm5, %v2316_v1 }
  0x91   :  { %2115 = vmatpush3.bf16.msk.msra.mxu0 %vm3808_vm3, %v2317_v19  ;;  %vm3812_vm3 = vnez %v3723_v50 }
  0x92   :  { %2139 = vmatpush3.bf16.msk.msra.mxu1 %vm3809_vm8, %v2317_v19  ;;  %2116 = vmatprep.subr.bf16.mxu0 %v2314_v0  ;;  %vm1239_vm8 = vcmask 1042432  }
  0x93   :  { %2140 = vmatprep.subr.bf16.mxu1 %v2314_v0 }
  0x95   :  { %2118 = vmatpush3.bf16.msk.msra.mxu0 %vm3810_vm13, %v2317_v19 }
  0x96   :  { %2142 = vmatpush3.bf16.msk.msra.mxu1 %vm3811_vm4, %v2317_v19  ;;  %2119 = vmatprep.subr.bf16.mxu0 %v2314_v0 }
  0x97   :  { %2143 = vmatprep.subr.bf16.mxu1 %v2314_v0 }
  0x99   :  { %2121 = vmatpush3.bf16.msk.msra.mxu0 %vm3812_vm3, %v2317_v19  ;;  %vm1241_vm3 = vcmask 1043456  }
  0x9a   :  { %2145 = vmatpush3.bf16.msk.msra.mxu1 %vm3170_vm6, %v2317_v19  ;;  %2146 = vmatprep.subr.bf16.mxu0 %v2314_v0  ;;  %vm3814_vm6 = vnez %v3759_v14 }
  0x9b   :  { %2170 = vmatprep.subr.bf16.mxu1 %v2314_v0 }
  0x9c   :  { %1871 = vmatmul.mubr.f32.vlgmr.msra.gmra.mrb[4].mxu0 %v2823_v53 }
  0x9d   :  { %1912 = vmatmul.mubr.f32.vlgmr.msra.gmra.mrb[4].mxu1 %v2823_v53  ;;  %2148 = vmatpush3.bf16.msk.msra.mxu0 %vm3182_vm14, %v2317_v19  ;;  %vm3813_vm14 = vnez %v3755_v13 }
  0x9e   :  { %2172 = vmatpush3.bf16.msk.msra.mxu1 %vm3193_vm12, %v2317_v19  ;;  %2149 = vmatprep.subr.bf16.mxu0 %v2314_v0  ;;  %vm3815_vm12 = vnez %v3763_v17 }
  0x9f   :  { %2173 = vmatprep.subr.bf16.mxu1 %v2314_v0  ;;  %1873 = vmatprep.mubr.msk.f32.mxu0 %vm3660_vm5, %v2316_v1 }
  0xa0   :  { %1914 = vmatprep.mubr.msk.f32.mxu1 %vm3660_vm5, %v2316_v1 }
  0xa1   :  { %2151 = vmatpush3.bf16.msk.msra.mxu0 %vm3211_vm7, %v2317_v19  ;;  %vm3816_vm7 = vnez %v3767_v18 }
  0xa2   :  { %2175 = vmatpush3.bf16.msk.msra.mxu1 %vm3228_vm9, %v2317_v19  ;;  %2152 = vmatprep.subr.bf16.mxu0 %v2314_v0  ;;  %vm3817_vm9 = vnez %v3772_v20 }
  0xa3   :  { %2176 = vmatprep.subr.bf16.mxu1 %v2314_v0 }
  0xa4   :  { %1874 = vmatmul.mubr.f32.gmra.mrb[4].mxu0 %v2985_v2 }
  0xa5   :  { %1915 = vmatmul.mubr.f32.gmra.mrb[4].mxu1 %v2985_v2  ;;  %2154 = vmatpush3.bf16.msk.msra.mxu0 %vm3240_vm15, %v2317_v19  ;;  %vm3818_vm15 = vnez %v3781_v28 }
  0xa6   :  { %2178 = vmatpush3.bf16.msk.msra.mxu1 %vm3813_vm14, %v2317_v19  ;;  %2155 = vmatprep.subr.bf16.mxu0 %v2314_v0  ;;  %vm1243_vm14 = vcmask 1044480  }
  0xa7   :  { %2179 = vmatprep.subr.bf16.mxu1 %v2314_v0  ;;  %1876 = vmatprep.mubr.msk.f32.mxu0 %vm3660_vm5, %v2316_v1 }
  0xa8   :  { %1917 = vmatprep.mubr.msk.f32.mxu1 %vm3660_vm5, %v2316_v1 }
  0xa9   :  { %2157 = vmatpush3.bf16.msk.msra.mxu0 %vm3814_vm6, %v2317_v19 }
  0xaa   :  { %2181 = vmatpush3.bf16.msk.msra.mxu1 %vm3815_vm12, %v2317_v19  ;;  %2158 = vmatprep.subr.bf16.mxu0 %v2314_v0 }
  0xab   :  { %2182 = vmatprep.subr.bf16.mxu1 %v2314_v0 }
  0xac   :  { %1877 = vmatmul.mubr.f32.gmra.mrb[4].mxu0 %v3121_v47 }
  0xad   :  { %1918 = vmatmul.mubr.f32.gmra.mrb[4].mxu1 %v3121_v47  ;;  %2160 = vmatpush3.bf16.msk.msra.mxu0 %vm3816_vm7, %v2317_v19  ;;  %vm1245_vm7 = vcmask 1045504  }
  0xae   :  { %2184 = vmatpush3.bf16.msk.msra.mxu1 %vm3817_vm9, %v2317_v19  ;;  %2161 = vmatprep.subr.bf16.mxu0 %v2314_v0  ;;  %vm1247_vm9 = vcmask 1046528  }
  0xaf   :  { %2185 = vmatprep.subr.bf16.mxu1 %v2314_v0  ;;  %1952 = vmatprep.mubr.msk.f32.mxu0 %vm3660_vm5, %v2316_v1 }
  0xb0   :  { %1993 = vmatprep.mubr.msk.f32.mxu1 %vm3660_vm5, %v2316_v1 }
  0xb1   :  { %2163 = vmatpush3.bf16.msk.msra.mxu0 %vm3315_vm2, %v2317_v19 }
  0xb2   :  { %2187 = vmatpush3.bf16.msk.msra.mxu1 %vm3818_vm15, %v2317_v19  ;;  %2164 = vmatprep.subr.bf16.mxu0 %v2314_v0 }
  0xb3   :  { %2188 = vmatprep.subr.bf16.mxu1 %v2314_v0 }
  0xb5   :  { %2166 = vmatpush3.bf16.msk.msra.mxu0 %vm3336_vm1, %v2317_v19 }
  0xb6   :  { %2190 = vmatpush3.bf16.msk.msra.mxu1 %vm3349_vm10, %v2317_v19  ;;  %2167 = vmatprep.subr.bf16.mxu0 %v2314_v0 }
  0xb7   :  { %2191 = vmatprep.subr.bf16.mxu1 %v2314_v0  ;;  %v3555_v0 = vshra.s32 %v2375_v10, 7 }
  0xb9   :  { %2169 = vmatpush3.bf16.msk.msra.mxu0 %vm3363_vm11, %v2317_v19  ;;  %v350_v36 = vrot.slane %v3555_v0, %v215_v9  ;;  %v496_v4 = vrot.slane %v3555_v0, %v361_v22  ;;  %v642_v5 = vrot.slane %v3555_v0, %v507_v23  ;;  %v788_v12 = vrot.slane %v3555_v0, %v653_v24 }
  0xba   :  { %2193 = vmatpush3.bf16.msk.msra.mxu1 %vm3374_vm0, %v2317_v19  ;;  %v204_v19 = vrot.slane %v3555_v0, %v69_v8  ;;  %vm1237_vm0 = vcmask 1041408   ;;  %v934_v52 = vrot.slane %v3555_v0, %v799_v25 }
  0xbb   :  { %vm351_vm10 = vcmp.eq.s32.totalorder %v2371_v6, %v350_v36  ;;  %vm497_vm1 = vcmp.eq.s32.totalorder %v2371_v6, %v496_v4  ;;  %vm643_vm11 = vcmp.eq.s32.totalorder %v2371_v6, %v642_v5  ;;  %vm789_vm13 = vcmp.eq.s32.totalorder %v2371_v6, %v788_v12 }
  0xbc   :  { %1953 = vmatmul.mubr.f32.vlgmr.msra.gmra.mrb[6].mxu0 %v2823_v53  ;;  %vm205_vm2 = vcmp.eq.s32.totalorder %v2371_v6, %v204_v19  ;;  %vm935_vm4 = vcmp.eq.s32.totalorder %v2371_v6, %v934_v52 }
  0xbd   :  { %1994 = vmatmul.mubr.f32.vlgmr.msra.gmra.mrb[6].mxu1 %v2823_v53  ;;  %1955 = vmatprep.mubr.msk.f32.mxu0 %vm3660_vm5, %v2316_v1 }
  0xbe   :  { %1996 = vmatprep.mubr.msk.f32.mxu1 %vm3660_vm5, %v2316_v1 }
  0xc4   :  { %1956 = vmatmul.mubr.f32.gmra.mrb[6].mxu0 %v2985_v2 }
  0xc5   :  { %1997 = vmatmul.mubr.f32.gmra.mrb[6].mxu1 %v2985_v2  ;;  %1958 = vmatprep.mubr.msk.f32.mxu0 %vm3660_vm5, %v2316_v1 }
  0xc6   :  { %1999 = vmatprep.mubr.msk.f32.mxu1 %vm3660_vm5, %v2316_v1  ;;  %vm1235_vm5 = vcmask 1040384  }
  0xcc   :  { %1959 = vmatmul.mubr.f32.gmra.mrb[6].mxu0 %v3121_v47 }
  0xcd   :  { %2000 = vmatmul.mubr.f32.gmra.mrb[6].mxu1 %v3121_v47 }
 0x137   :  { %v195_v1 = vpop.f32.mrb[0].mxu0 }
 0x138   :  { %v206_v37 = vsel %vm205_vm2, %v195_v1, 0.0  ;;  %v341_v40 = vpop.f32.mrb[0].mxu1  ;;  %v1714_v41 = vpop.f32.mrb[1].mxu0 }
 0x139   :  { %v207_v42 = vrot.slane %v206_v37, 4  ;;  %v352_v53 = vsel %vm351_vm10, %v341_v40, 0.0  ;;  %v1755_v10 = vpop.f32.mrb[1].mxu1  ;;  %v1080_v41 = vrot.slane %v3555_v0, %v945_v26 }
 0x13a   :  { %v353_v56 = vrot.slane %v352_v53, 4 }
 0x13b   :  { %v208_v57 = vadd.f32 %v207_v42, %v206_v37  ;;  %v1226_v42 = vrot.slane %v3555_v0, %v1091_v27  ;;  %vm1081_vm6 = vcmp.eq.s32.totalorder %v2371_v6, %v1080_v41 }
 0x13c   :  { %v354_v58 = vadd.f32 %v353_v56, %v352_v53 }
 0x13d   :  { %v209_v59 = vrot.slane %v208_v57, 2  ;;  %vm1227_vm12 = vcmp.eq.s32.totalorder %v2371_v6, %v1226_v42 }
 0x13e   :  { %v355_v8 = vrot.slane %v354_v58, 2 }
 0x13f   :  { %v210_v60 = vadd.f32 %v209_v59, %v208_v57 }
 0x140   :  { %v356_v61 = vadd.f32 %v355_v8, %v354_v58 }
 0x141   :  { %v211_v62 = vrot.slane %v210_v60, 1 }
 0x142   :  { %v357_v9 = vrot.slane %v356_v61, 1 }
 0x143   :  { %v212_v63 = vadd.f32 %v211_v62, %v210_v60 }
 0x144   :  { %v358_v2 = vadd.f32 %v357_v9, %v356_v61 }
 0x146   :  { %v1236_v3 = vsel %vm1235_vm5, %v212_v63, %v358_v2 }
 0x15f   :  { %v487_v7 = vpop.f32.mrb[2].mxu0 }
 0x160   :  { %v498_v11 = vsel %vm497_vm1, %v487_v7, 0.0  ;;  %v633_v15 = vpop.f32.mrb[2].mxu1  ;;  %v1796_v16 = vpop.f32.mrb[3].mxu0 }
 0x161   :  { %v499_v29 = vrot.slane %v498_v11, 4  ;;  %v644_v43 = vsel %vm643_vm11, %v633_v15, 0.0  ;;  %v1837_v44 = vpop.f32.mrb[3].mxu1 }
 0x162   :  { %v645_v45 = vrot.slane %v644_v43, 4 }
 0x163   :  { %v500_v46 = vadd.f32 %v499_v29, %v498_v11 }
 0x164   :  { %v646_v47 = vadd.f32 %v645_v45, %v644_v43 }
 0x165   :  { %v501_v48 = vrot.slane %v500_v46, 2 }
 0x166   :  { %v647_v22 = vrot.slane %v646_v47, 2 }
 0x167   :  { %v502_v49 = vadd.f32 %v501_v48, %v500_v46 }
 0x168   :  { %v648_v50 = vadd.f32 %v647_v22, %v646_v47 }
 0x169   :  { %v503_v51 = vrot.slane %v502_v49, 1 }
 0x16a   :  { %v649_v23 = vrot.slane %v648_v50, 1 }
 0x16b   :  { %v504_v38 = vadd.f32 %v503_v51, %v502_v49 }
 0x16c   :  { %v650_v34 = vadd.f32 %v649_v23, %v648_v50 }
 0x16d   :  { %v1238_v39 = vsel %vm1237_vm0, %v1236_v3, %v504_v38 }
 0x16e   :  { %v1240_v35 = vsel %vm1239_vm8, %v1238_v39, %v650_v34 }
 0x17f   :  { %v779_v54 = vpop.f32.mrb[4].mxu0 }
 0x180   :  { %v790_v55 = vsel %vm789_vm13, %v779_v54, 0.0  ;;  %v925_v13 = vpop.f32.mrb[4].mxu1  ;;  %v1878_v14 = vpop.f32.mrb[5].mxu0 }
 0x181   :  { %v791_v17 = vrot.slane %v790_v55, 4  ;;  %v936_v18 = vsel %vm935_vm4, %v925_v13, 0.0  ;;  %v1919_v20 = vpop.f32.mrb[5].mxu1 }
 0x182   :  { %v937_v21 = vrot.slane %v936_v18, 4 }
 0x183   :  { %v792_v28 = vadd.f32 %v791_v17, %v790_v55 }
 0x184   :  { %v938_v30 = vadd.f32 %v937_v21, %v936_v18 }
 0x185   :  { %v793_v31 = vrot.slane %v792_v28, 2 }
 0x186   :  { %v939_v24 = vrot.slane %v938_v30, 2 }
 0x187   :  { %v794_v32 = vadd.f32 %v793_v31, %v792_v28 }
 0x188   :  { %v940_v33 = vadd.f32 %v939_v24, %v938_v30 }
 0x189   :  { %v795_v19 = vrot.slane %v794_v32, 1 }
 0x18a   :  { %v941_v25 = vrot.slane %v940_v33, 1 }
 0x18b   :  { %v796_v36 = vadd.f32 %v795_v19, %v794_v32 }
 0x18c   :  { %v942_v1 = vadd.f32 %v941_v25, %v940_v33 }
 0x18d   :  { %v1242_v37 = vsel %vm1241_vm3, %v1240_v35, %v796_v36 }
 0x18e   :  { %v1244_v40 = vsel %vm1243_vm14, %v1242_v37, %v942_v1 }
 0x19f   :  { %v1071_v53 = vpop.f32.mrb[6].mxu0 }
 0x1a0   :  { %v1082_v10 = vsel %vm1081_vm6, %v1071_v53, 0.0  ;;  %v1217_v56 = vpop.f32.mrb[6].mxu1  ;;  %v1960_v57 = vpop.f32.mrb[7].mxu0 }
 0x1a1   :  { %v1083_v58 = vrot.slane %v1082_v10, 4  ;;  %v1228_v59 = vsel %vm1227_vm12, %v1217_v56, 0.0  ;;  %v2001_v8 = vpop.f32.mrb[7].mxu1 }
 0x1a2   :  { %v1229_v60 = vrot.slane %v1228_v59, 4 }
 0x1a3   :  { %v1084_v61 = vadd.f32 %v1083_v58, %v1082_v10 }
 0x1a4   :  { %v1230_v62 = vadd.f32 %v1229_v60, %v1228_v59 }
 0x1a5   :  { %v1085_v9 = vrot.slane %v1084_v61, 2 }
 0x1a6   :  { %v1231_v26 = vrot.slane %v1230_v62, 2 }
 0x1a7   :  { %v1086_v63 = vadd.f32 %v1085_v9, %v1084_v61 }
 0x1a8   :  { %v1232_v2 = vadd.f32 %v1231_v26, %v1230_v62 }
 0x1a9   :  { %v1087_v3 = vrot.slane %v1086_v63, 1 }
 0x1aa   :  { %v1233_v27 = vrot.slane %v1232_v2, 1 }
 0x1ab   :  { %v1088_v6 = vadd.f32 %v1087_v3, %v1086_v63 }
 0x1ac   :  { %v1234_v0 = vadd.f32 %v1233_v27, %v1232_v2 }
 0x1ad   :  { %v1246_v4 = vsel %vm1245_vm7, %v1244_v40, %v1088_v6 }
 0x1ae   :  { %v1248_v5 = vsel %vm1247_vm9, %v1246_v4, %v1234_v0 }
 0x1af   :  { %1249 = vst [vmem:[#allocation7] sm:$0xff] %v1248_v5 }
 0x1b0   :  { %2293 = shalt.err (!%p2290_p6)
}
 0x1b1   :  { %s2294_s10 = scalar_lea.hbm %s3603_s2, 128 }
 0x1b2   :  { %p2295_p7 = scmp.ne.s32.totalorder %s3603_s2, %s2294_s10  ;;  %p2298_p8 = scmp.lt.u32.totalorder %s2294_s10, %s3603_s2 }
 0x1b4   :  { %p2300_p9 = pnand %p2298_p8, %p2295_p7 }
 0x1b6   :  { %2303 = shalt.err (!%p2300_p9)
}
 0x1b7   :  { %1259 = dma.vmem_to_hbm [thread:$0]  %s1257_s6, 128, %s3603_s2, [#allocation4]  }
 0x1b8   :  { %2308 = dma.done.wait [#allocation4], 128  }
 0x1b9   :  { %2309 = vsyncadd [#allocation4], 4294967168 }
 0x1ba   :  { %1263 = vsyncpa [#allocation3], 1 }
 0x1bb   :  { %1264 = vsyncpa [#allocation6], 1 }
 0x1bc   :  { %1265 = vsyncpa [#allocation4], 1 }

</bundles_post_ra>
